<compile_context>
chip_gen: v7x
topology: tpu7x:2x2x1
jax: 0.10.0
libtpu: 0.0.40
codegen_flags: <defaults>
</compile_context>

<pallas_src>
import functools

import jax
import jax.numpy as jnp
from jax.experimental import pallas as pl
from jax.experimental.pallas import tpu as pltpu


def _round_up(x, m):
    return (x + m - 1) // m * m


def _double_conv_kernel(x_ref, w1_ref, w2_ref, b1_ref, b2_ref, mask_ref,
                        o_ref, *, H, W, Cout):
    """Fused (conv3x3 -> foldedBN -> ReLU) x2 for a group of batch elements.

    x_ref:    (Nb, Cinp, H*W)   flattened NCHW input (lane axis = H*W)
    w1_ref:   (Coutp, 9*Cinp)   packed stage-1 weights, tap-major, BN-scale folded
    w2_ref:   (Coutp, 9*Coutp)  packed stage-2 weights, BN-scale folded
    b*_ref:   (Coutp, 1)        folded BatchNorm bias
    mask_ref: (16, H*W)         f32 border masks for the 9 taps (rows 0..8)
    o_ref:    (Nb, Cout, H*W)
    """
    P = H * W
    Nb = x_ref.shape[0]
    shifts = [(-(dy * W + dx)) % P for dy in (-1, 0, 1) for dx in (-1, 0, 1)]

    masks = mask_ref[...]                      # (16, P)
    w1 = w1_ref[...]
    w2 = w2_ref[...]
    b1 = b1_ref[...]                           # (Coutp, 1)
    b2 = b2_ref[...]

    def conv3x3(x, w_packed):
        # x: (C, P); w_packed: (Coutp, 9*C) with BN scale pre-folded.
        C = x.shape[0]
        taps = []
        for k in range(9):
            shifted = pltpu.roll(x, shifts[k], 1) if shifts[k] else x
            if k != 4:                         # center tap: no border mask needed
                shifted = shifted * masks[k:k + 1]
            taps.append(shifted)

        if C >= 128:
            # Wide-channel path: per-tap K already fills the MXU depth; skip the
            # 9x patch temporary (9*C*P*4 B of VMEM + copies) and accumulate.
            acc = None
            for k in range(9):
                w_k = w_packed[:, k * C:(k + 1) * C]
                part = jnp.dot(w_k, taps[k], preferred_element_type=jnp.float32)
                acc = part if acc is None else acc + part
            return acc

        # Narrow-channel path: one large-K (K = 9*C) matmul on a packed patch.
        patch = jnp.concatenate(taps, axis=0)  # (9*C, P), lane-dense
        return jnp.dot(w_packed, patch, preferred_element_type=jnp.float32)

    for n in range(Nb):                        # unrolled; amortizes grid overhead
        x = x_ref[n].astype(jnp.float32)       # (Cinp, P)
        # Stage 1: conv -> (+bias) -> ReLU; intermediate never leaves VMEM/vregs.
        h = jnp.maximum(conv3x3(x, w1) + b1, 0.0)
        # Stage 2
        h = jnp.maximum(conv3x3(h, w2) + b2, 0.0)
        if h.shape[0] > Cout:                  # drop padded output channels
            h = h[:Cout, :]
        o_ref[n] = h.astype(o_ref.dtype)


def _pack_conv_weight(w_hwio, scale, cin_p, cout_p):
    """HWIO (3,3,Ci,Co) -> (cout_p, 9*cin_p), tap-major (ky,kx,ci), rows scaled
    by the folded BatchNorm scale (scale commutes through the conv)."""
    _, _, ci, co = w_hwio.shape
    w = jnp.transpose(w_hwio, (3, 0, 1, 2)) * scale[:, None, None, None]
    w = jnp.pad(w, ((0, cout_p - co), (0, 0), (0, 0), (0, cin_p - ci)))
    return w.reshape(cout_p, 9 * cin_p).astype(jnp.float32)


def _pad_channel_vec(v, c_p):
    return jnp.pad(v, (0, c_p - v.shape[0])).reshape(c_p, 1).astype(jnp.float32)


def _make_tap_masks(H, W):
    """(16, H*W) f32: rows 0..8 are the 'same'-padding border masks per tap."""
    P = H * W
    pos = jnp.arange(P, dtype=jnp.int32)
    col = pos % W
    row = pos // W
    rows = []
    for dy in (-1, 0, 1):
        for dx in (-1, 0, 1):
            m = ((col + dx >= 0) & (col + dx < W) &
                 (row + dy >= 0) & (row + dy < H))
            rows.append(m.astype(jnp.float32))
    rows += [jnp.zeros((P,), jnp.float32)] * 7         # pad to 16 sublanes
    return jnp.stack(rows, axis=0)


@jax.jit
def double_conv_forward(x_nchw, params):
    """Forward pass of double_conv (se=False). NCHW in / NCHW out like PyTorch."""
    N, Cin, H, W = x_nchw.shape
    Cout = params["w1"].shape[-1]
    P = H * W                     # NOTE: demo sizes keep H*W a multiple of 128
    cin_p = _round_up(Cin, 8)
    cout_p = _round_up(Cout, 8)

    # Largest batch-group size <= 8 that divides N (amortizes per-step overhead).
    nb = max(d for d in range(1, min(N, 8) + 1) if N % d == 0)

    x_flat = x_nchw.reshape(N, Cin, P)                 # free reshape
    if cin_p > Cin:                                    # one-time channel pad
        x_flat = jnp.pad(x_flat, ((0, 0), (0, cin_p - Cin), (0, 0)))

    w1p = _pack_conv_weight(params["w1"], params["s1"], cin_p, cout_p)
    w2p = _pack_conv_weight(params["w2"], params["s2"], cout_p, cout_p)
    b1 = _pad_channel_vec(params["b1"], cout_p)
    b2 = _pad_channel_vec(params["b2"], cout_p)
    masks = _make_tap_masks(H, W)

    kernel = functools.partial(_double_conv_kernel, H=H, W=W, Cout=Cout)
    out = pl.pallas_call(
        kernel,
        out_shape=jax.ShapeDtypeStruct((N, Cout, P), jnp.float32),
        grid_spec=pltpu.PrefetchScalarGridSpec(
            num_scalar_prefetch=0,
            grid=(N // nb,),
            in_specs=[
                pl.BlockSpec((nb, cin_p, P), lambda n: (n, 0, 0)),       # x
                pl.BlockSpec((cout_p, 9 * cin_p), lambda n: (0, 0)),     # w1
                pl.BlockSpec((cout_p, 9 * cout_p), lambda n: (0, 0)),    # w2
                pl.BlockSpec((cout_p, 1), lambda n: (0, 0)),             # bias1
                pl.BlockSpec((cout_p, 1), lambda n: (0, 0)),             # bias2
                pl.BlockSpec((16, P), lambda n: (0, 0)),                 # masks
            ],
            out_specs=pl.BlockSpec((nb, Cout, P), lambda n: (n, 0, 0)),
        ),
        compiler_params=pltpu.CompilerParams(
            dimension_semantics=("parallel",)),
    )(x_flat, w1p, w2p, b1, b2, masks)

    return out.reshape(N, Cout, H, W)                  # free reshape, no slice


def make_double_conv_params(key, in_channel, out_channel):
    """Deterministic parameter init matching the PyTorch module's shapes."""
    k1, k2, k3, k4 = jax.random.split(key, 4)
    eps = 1e-5

    def kaiming(k, cout, cin):
        fan_in = cin * 9
        bound = (1.0 / fan_in) ** 0.5
        # PyTorch weight layout (Cout, Cin, 3, 3) -> HWIO (3, 3, Cin, Cout)
        w_oihw = jax.random.uniform(k, (cout, cin, 3, 3), jnp.float32,
                                    -bound, bound)
        return jnp.transpose(w_oihw, (2, 3, 1, 0))

    def bn_fold(k, c):
        kg, kb, km, kv = jax.random.split(k, 4)
        gamma = 1.0 + 0.1 * jax.random.normal(kg, (c,), jnp.float32)
        beta = 0.1 * jax.random.normal(kb, (c,), jnp.float32)
        running_mean = 0.1 * jax.random.normal(km, (c,), jnp.float32)
        running_var = jnp.abs(1.0 + 0.1 * jax.random.normal(kv, (c,), jnp.float32))
        scale = gamma / jnp.sqrt(running_var + eps)
        bias = beta - running_mean * scale
        return scale, bias

    w1 = kaiming(k1, out_channel, in_channel)
    w2 = kaiming(k2, out_channel, out_channel)
    s1, b1 = bn_fold(k3, out_channel)
    s2, b2 = bn_fold(k4, out_channel)
    return dict(w1=w1, s1=s1, b1=b1, w2=w2, s2=s2, b2=b2)


def _reference_forward(x_nchw, params):
    """Plain-JAX reference (lax conv) for a correctness check."""
    affine = lambda s, b, y: y * s[None, :, None, None] + b[None, :, None, None]

    def conv(x, w_hwio):
        w_oihw = jnp.transpose(w_hwio, (3, 2, 0, 1))
        return jax.lax.conv_general_dilated(
            x, w_oihw, window_strides=(1, 1), padding=((1, 1), (1, 1)),
            dimension_numbers=("NCHW", "OIHW", "NCHW"))

    y = jnp.maximum(affine(params["s1"], params["b1"], conv(x_nchw, params["w1"])), 0.0)
    y = jnp.maximum(affine(params["s2"], params["b2"], conv(y, params["w2"])), 0.0)
    return y


if __name__ == "__main__":
    key = jax.random.PRNGKey(0)
    kx, kp = jax.random.split(key)

    N, Cin, Cout, H, W = 2, 4, 8, 16, 16
    x = jax.random.normal(kx, (N, Cin, H, W), jnp.float32)
    params = make_double_conv_params(kp, Cin, Cout)

    out = double_conv_forward(x, params)
    out = jax.block_until_ready(out)

    ref = _reference_forward(x, params)
    assert out.shape == (N, Cout, H, W), out.shape
    assert jnp.allclose(out, ref, rtol=1e-4, atol=1e-4), "mismatch vs reference"

    print("KERNEL_OK")
</pallas_src>

<mosaic_0001>
module attributes {stable_mosaic.version = 11 : i64} {
  func.func @_double_conv_kernel(%arg0: i32, %arg1: memref<2x8x256xf32, #tpu.memory_space<vmem>>, %arg2: memref<8x72xf32, #tpu.memory_space<vmem>>, %arg3: memref<8x72xf32, #tpu.memory_space<vmem>>, %arg4: memref<8x1xf32, #tpu.memory_space<vmem>>, %arg5: memref<8x1xf32, #tpu.memory_space<vmem>>, %arg6: memref<16x256xf32, #tpu.memory_space<vmem>>, %arg7: memref<2x8x256xf32, #tpu.memory_space<vmem>>) attributes {dimension_semantics = [#tpu.dimension_semantics<parallel>], iteration_bounds = array<i64: 1>, scalar_prefetch = 0 : i64, scratch_operands = 0 : i64, tpu.core_type = #tpu.core_type<tc>, window_params = [{transform_indices = @transform_0, window_bounds = array<i64: 2, 8, 256>}, {pipeline_mode = #tpu.pipeline_mode<synchronous>, transform_indices = @transform_1, window_bounds = array<i64: 8, 72>}, {pipeline_mode = #tpu.pipeline_mode<synchronous>, transform_indices = @transform_2, window_bounds = array<i64: 8, 72>}, {pipeline_mode = #tpu.pipeline_mode<synchronous>, transform_indices = @transform_3, window_bounds = array<i64: 8, 1>}, {pipeline_mode = #tpu.pipeline_mode<synchronous>, transform_indices = @transform_4, window_bounds = array<i64: 8, 1>}, {pipeline_mode = #tpu.pipeline_mode<synchronous>, transform_indices = @transform_5, window_bounds = array<i64: 16, 256>}, {transform_indices = @transform_6, window_bounds = array<i64: 2, 8, 256>}]} {
    %c0 = arith.constant 0 : index
    %c0_0 = arith.constant 0 : index
    %0 = vector.load %arg6[%c0, %c0_0] : memref<16x256xf32, #tpu.memory_space<vmem>>, vector<16x256xf32>
    %c0_1 = arith.constant 0 : index
    %c0_2 = arith.constant 0 : index
    %1 = vector.load %arg2[%c0_1, %c0_2] : memref<8x72xf32, #tpu.memory_space<vmem>>, vector<8x72xf32>
    %c0_3 = arith.constant 0 : index
    %c0_4 = arith.constant 0 : index
    %2 = vector.load %arg3[%c0_3, %c0_4] : memref<8x72xf32, #tpu.memory_space<vmem>>, vector<8x72xf32>
    %c0_5 = arith.constant 0 : index
    %c0_6 = arith.constant 0 : index
    %3 = vector.load %arg4[%c0_5, %c0_6] : memref<8x1xf32, #tpu.memory_space<vmem>>, vector<8x1xf32>
    %c0_7 = arith.constant 0 : index
    %c0_8 = arith.constant 0 : index
    %4 = vector.load %arg5[%c0_7, %c0_8] : memref<8x1xf32, #tpu.memory_space<vmem>>, vector<8x1xf32>
    %c0_9 = arith.constant 0 : index
    %c0_10 = arith.constant 0 : index
    %c0_11 = arith.constant 0 : index
    %5 = vector.load %arg1[%c0_9, %c0_10, %c0_11] : memref<2x8x256xf32, #tpu.memory_space<vmem>>, vector<1x8x256xf32>
    %6 = vector.shape_cast %5 : vector<1x8x256xf32> to vector<8x256xf32>
    %c17_i32 = arith.constant 17 : i32
    %7 = tpu.dynamic_rotate %6 by %c17_i32 dim 1 : vector<8x256xf32>, i32 -> vector<8x256xf32>
    %8 = vector.extract_strided_slice %0 {offsets = [0, 0], sizes = [1, 256], strides = [1, 1]} : vector<16x256xf32> to vector<1x256xf32>
    %9 = vector.broadcast %8 : vector<1x256xf32> to vector<8x256xf32>
    %10 = arith.mulf %7, %9 : vector<8x256xf32>
    %c16_i32 = arith.constant 16 : i32
    %11 = tpu.dynamic_rotate %6 by %c16_i32 dim 1 : vector<8x256xf32>, i32 -> vector<8x256xf32>
    %12 = vector.extract_strided_slice %0 {offsets = [1, 0], sizes = [1, 256], strides = [1, 1]} : vector<16x256xf32> to vector<1x256xf32>
    %13 = vector.broadcast %12 : vector<1x256xf32> to vector<8x256xf32>
    %14 = arith.mulf %11, %13 : vector<8x256xf32>
    %c15_i32 = arith.constant 15 : i32
    %15 = tpu.dynamic_rotate %6 by %c15_i32 dim 1 : vector<8x256xf32>, i32 -> vector<8x256xf32>
    %16 = vector.extract_strided_slice %0 {offsets = [2, 0], sizes = [1, 256], strides = [1, 1]} : vector<16x256xf32> to vector<1x256xf32>
    %17 = vector.broadcast %16 : vector<1x256xf32> to vector<8x256xf32>
    %18 = arith.mulf %15, %17 : vector<8x256xf32>
    %c1_i32 = arith.constant 1 : i32
    %19 = tpu.dynamic_rotate %6 by %c1_i32 dim 1 : vector<8x256xf32>, i32 -> vector<8x256xf32>
    %20 = vector.extract_strided_slice %0 {offsets = [3, 0], sizes = [1, 256], strides = [1, 1]} : vector<16x256xf32> to vector<1x256xf32>
    %21 = vector.broadcast %20 : vector<1x256xf32> to vector<8x256xf32>
    %22 = arith.mulf %19, %21 : vector<8x256xf32>
    %c255_i32 = arith.constant 255 : i32
    %23 = tpu.dynamic_rotate %6 by %c255_i32 dim 1 : vector<8x256xf32>, i32 -> vector<8x256xf32>
    %24 = vector.extract_strided_slice %0 {offsets = [5, 0], sizes = [1, 256], strides = [1, 1]} : vector<16x256xf32> to vector<1x256xf32>
    %25 = vector.broadcast %24 : vector<1x256xf32> to vector<8x256xf32>
    %26 = arith.mulf %23, %25 : vector<8x256xf32>
    %c241_i32 = arith.constant 241 : i32
    %27 = tpu.dynamic_rotate %6 by %c241_i32 dim 1 : vector<8x256xf32>, i32 -> vector<8x256xf32>
    %28 = vector.extract_strided_slice %0 {offsets = [6, 0], sizes = [1, 256], strides = [1, 1]} : vector<16x256xf32> to vector<1x256xf32>
    %29 = vector.broadcast %28 : vector<1x256xf32> to vector<8x256xf32>
    %30 = arith.mulf %27, %29 : vector<8x256xf32>
    %c240_i32 = arith.constant 240 : i32
    %31 = tpu.dynamic_rotate %6 by %c240_i32 dim 1 : vector<8x256xf32>, i32 -> vector<8x256xf32>
    %32 = vector.extract_strided_slice %0 {offsets = [7, 0], sizes = [1, 256], strides = [1, 1]} : vector<16x256xf32> to vector<1x256xf32>
    %33 = vector.broadcast %32 : vector<1x256xf32> to vector<8x256xf32>
    %34 = arith.mulf %31, %33 : vector<8x256xf32>
    %c239_i32 = arith.constant 239 : i32
    %35 = tpu.dynamic_rotate %6 by %c239_i32 dim 1 : vector<8x256xf32>, i32 -> vector<8x256xf32>
    %36 = vector.extract_strided_slice %0 {offsets = [8, 0], sizes = [1, 256], strides = [1, 1]} : vector<16x256xf32> to vector<1x256xf32>
    %37 = vector.broadcast %36 : vector<1x256xf32> to vector<8x256xf32>
    %38 = arith.mulf %35, %37 : vector<8x256xf32>
    %39 = tpu.concatenate %10, %14, %18, %22, %6, %26, %30, %34, %38 in 0 : vector<8x256xf32>, vector<8x256xf32>, vector<8x256xf32>, vector<8x256xf32>, vector<8x256xf32>, vector<8x256xf32>, vector<8x256xf32>, vector<8x256xf32>, vector<8x256xf32> -> vector<72x256xf32>
    %cst = arith.constant dense<0.000000e+00> : vector<8x256xf32>
    %40 = tpu.matmul %1, %39, %cst {dimension_numbers = #tpu.dot_dimension_numbers<[1], [0], [0], [1], [0, 0, 1, 1], [], []>} : vector<8x72xf32>, vector<72x256xf32>, vector<8x256xf32> -> vector<8x256xf32>
    %41 = vector.broadcast %3 : vector<8x1xf32> to vector<8x256xf32>
    %42 = arith.addf %40, %41 : vector<8x256xf32>
    %cst_12 = arith.constant 0.000000e+00 : f32
    %43 = vector.broadcast %cst_12 : f32 to vector<8x256xf32>
    %44 = arith.maximumf %42, %43 : vector<8x256xf32>
    %c17_i32_13 = arith.constant 17 : i32
    %45 = tpu.dynamic_rotate %44 by %c17_i32_13 dim 1 : vector<8x256xf32>, i32 -> vector<8x256xf32>
    %46 = vector.extract_strided_slice %0 {offsets = [0, 0], sizes = [1, 256], strides = [1, 1]} : vector<16x256xf32> to vector<1x256xf32>
    %47 = vector.broadcast %46 : vector<1x256xf32> to vector<8x256xf32>
    %48 = arith.mulf %45, %47 : vector<8x256xf32>
    %c16_i32_14 = arith.constant 16 : i32
    %49 = tpu.dynamic_rotate %44 by %c16_i32_14 dim 1 : vector<8x256xf32>, i32 -> vector<8x256xf32>
    %50 = vector.extract_strided_slice %0 {offsets = [1, 0], sizes = [1, 256], strides = [1, 1]} : vector<16x256xf32> to vector<1x256xf32>
    %51 = vector.broadcast %50 : vector<1x256xf32> to vector<8x256xf32>
    %52 = arith.mulf %49, %51 : vector<8x256xf32>
    %c15_i32_15 = arith.constant 15 : i32
    %53 = tpu.dynamic_rotate %44 by %c15_i32_15 dim 1 : vector<8x256xf32>, i32 -> vector<8x256xf32>
    %54 = vector.extract_strided_slice %0 {offsets = [2, 0], sizes = [1, 256], strides = [1, 1]} : vector<16x256xf32> to vector<1x256xf32>
    %55 = vector.broadcast %54 : vector<1x256xf32> to vector<8x256xf32>
    %56 = arith.mulf %53, %55 : vector<8x256xf32>
    %c1_i32_16 = arith.constant 1 : i32
    %57 = tpu.dynamic_rotate %44 by %c1_i32_16 dim 1 : vector<8x256xf32>, i32 -> vector<8x256xf32>
    %58 = vector.extract_strided_slice %0 {offsets = [3, 0], sizes = [1, 256], strides = [1, 1]} : vector<16x256xf32> to vector<1x256xf32>
    %59 = vector.broadcast %58 : vector<1x256xf32> to vector<8x256xf32>
    %60 = arith.mulf %57, %59 : vector<8x256xf32>
    %c255_i32_17 = arith.constant 255 : i32
    %61 = tpu.dynamic_rotate %44 by %c255_i32_17 dim 1 : vector<8x256xf32>, i32 -> vector<8x256xf32>
    %62 = vector.extract_strided_slice %0 {offsets = [5, 0], sizes = [1, 256], strides = [1, 1]} : vector<16x256xf32> to vector<1x256xf32>
    %63 = vector.broadcast %62 : vector<1x256xf32> to vector<8x256xf32>
    %64 = arith.mulf %61, %63 : vector<8x256xf32>
    %c241_i32_18 = arith.constant 241 : i32
    %65 = tpu.dynamic_rotate %44 by %c241_i32_18 dim 1 : vector<8x256xf32>, i32 -> vector<8x256xf32>
    %66 = vector.extract_strided_slice %0 {offsets = [6, 0], sizes = [1, 256], strides = [1, 1]} : vector<16x256xf32> to vector<1x256xf32>
    %67 = vector.broadcast %66 : vector<1x256xf32> to vector<8x256xf32>
    %68 = arith.mulf %65, %67 : vector<8x256xf32>
    %c240_i32_19 = arith.constant 240 : i32
    %69 = tpu.dynamic_rotate %44 by %c240_i32_19 dim 1 : vector<8x256xf32>, i32 -> vector<8x256xf32>
    %70 = vector.extract_strided_slice %0 {offsets = [7, 0], sizes = [1, 256], strides = [1, 1]} : vector<16x256xf32> to vector<1x256xf32>
    %71 = vector.broadcast %70 : vector<1x256xf32> to vector<8x256xf32>
    %72 = arith.mulf %69, %71 : vector<8x256xf32>
    %c239_i32_20 = arith.constant 239 : i32
    %73 = tpu.dynamic_rotate %44 by %c239_i32_20 dim 1 : vector<8x256xf32>, i32 -> vector<8x256xf32>
    %74 = vector.extract_strided_slice %0 {offsets = [8, 0], sizes = [1, 256], strides = [1, 1]} : vector<16x256xf32> to vector<1x256xf32>
    %75 = vector.broadcast %74 : vector<1x256xf32> to vector<8x256xf32>
    %76 = arith.mulf %73, %75 : vector<8x256xf32>
    %77 = tpu.concatenate %48, %52, %56, %60, %44, %64, %68, %72, %76 in 0 : vector<8x256xf32>, vector<8x256xf32>, vector<8x256xf32>, vector<8x256xf32>, vector<8x256xf32>, vector<8x256xf32>, vector<8x256xf32>, vector<8x256xf32>, vector<8x256xf32> -> vector<72x256xf32>
    %cst_21 = arith.constant dense<0.000000e+00> : vector<8x256xf32>
    %78 = tpu.matmul %2, %77, %cst_21 {dimension_numbers = #tpu.dot_dimension_numbers<[1], [0], [0], [1], [0, 0, 1, 1], [], []>} : vector<8x72xf32>, vector<72x256xf32>, vector<8x256xf32> -> vector<8x256xf32>
    %79 = vector.broadcast %4 : vector<8x1xf32> to vector<8x256xf32>
    %80 = arith.addf %78, %79 : vector<8x256xf32>
    %cst_22 = arith.constant 0.000000e+00 : f32
    %81 = vector.broadcast %cst_22 : f32 to vector<8x256xf32>
    %82 = arith.maximumf %80, %81 : vector<8x256xf32>
    %c0_23 = arith.constant 0 : index
    %c0_24 = arith.constant 0 : index
    %c0_25 = arith.constant 0 : index
    %83 = vector.load %arg7[%c0_23, %c0_24, %c0_25] : memref<2x8x256xf32, #tpu.memory_space<vmem>>, vector<1x8x256xf32>
    %84 = vector.shape_cast %83 : vector<1x8x256xf32> to vector<8x256xf32>
    %85 = vector.shape_cast %82 : vector<8x256xf32> to vector<1x8x256xf32>
    tpu.vector_store %arg7[%c0_23, %c0_24, %c0_25], %85 {strides = array<i32>} : memref<2x8x256xf32, #tpu.memory_space<vmem>>, vector<1x8x256xf32>,
    %c1 = arith.constant 1 : index
    %c0_26 = arith.constant 0 : index
    %c0_27 = arith.constant 0 : index
    %86 = vector.load %arg1[%c1, %c0_26, %c0_27] : memref<2x8x256xf32, #tpu.memory_space<vmem>>, vector<1x8x256xf32>
    %87 = vector.shape_cast %86 : vector<1x8x256xf32> to vector<8x256xf32>
    %c17_i32_28 = arith.constant 17 : i32
    %88 = tpu.dynamic_rotate %87 by %c17_i32_28 dim 1 : vector<8x256xf32>, i32 -> vector<8x256xf32>
    %89 = vector.extract_strided_slice %0 {offsets = [0, 0], sizes = [1, 256], strides = [1, 1]} : vector<16x256xf32> to vector<1x256xf32>
    %90 = vector.broadcast %89 : vector<1x256xf32> to vector<8x256xf32>
    %91 = arith.mulf %88, %90 : vector<8x256xf32>
    %c16_i32_29 = arith.constant 16 : i32
    %92 = tpu.dynamic_rotate %87 by %c16_i32_29 dim 1 : vector<8x256xf32>, i32 -> vector<8x256xf32>
    %93 = vector.extract_strided_slice %0 {offsets = [1, 0], sizes = [1, 256], strides = [1, 1]} : vector<16x256xf32> to vector<1x256xf32>
    %94 = vector.broadcast %93 : vector<1x256xf32> to vector<8x256xf32>
    %95 = arith.mulf %92, %94 : vector<8x256xf32>
    %c15_i32_30 = arith.constant 15 : i32
    %96 = tpu.dynamic_rotate %87 by %c15_i32_30 dim 1 : vector<8x256xf32>, i32 -> vector<8x256xf32>
    %97 = vector.extract_strided_slice %0 {offsets = [2, 0], sizes = [1, 256], strides = [1, 1]} : vector<16x256xf32> to vector<1x256xf32>
    %98 = vector.broadcast %97 : vector<1x256xf32> to vector<8x256xf32>
    %99 = arith.mulf %96, %98 : vector<8x256xf32>
    %c1_i32_31 = arith.constant 1 : i32
    %100 = tpu.dynamic_rotate %87 by %c1_i32_31 dim 1 : vector<8x256xf32>, i32 -> vector<8x256xf32>
    %101 = vector.extract_strided_slice %0 {offsets = [3, 0], sizes = [1, 256], strides = [1, 1]} : vector<16x256xf32> to vector<1x256xf32>
    %102 = vector.broadcast %101 : vector<1x256xf32> to vector<8x256xf32>
    %103 = arith.mulf %100, %102 : vector<8x256xf32>
    %c255_i32_32 = arith.constant 255 : i32
    %104 = tpu.dynamic_rotate %87 by %c255_i32_32 dim 1 : vector<8x256xf32>, i32 -> vector<8x256xf32>
    %105 = vector.extract_strided_slice %0 {offsets = [5, 0], sizes = [1, 256], strides = [1, 1]} : vector<16x256xf32> to vector<1x256xf32>
    %106 = vector.broadcast %105 : vector<1x256xf32> to vector<8x256xf32>
    %107 = arith.mulf %104, %106 : vector<8x256xf32>
    %c241_i32_33 = arith.constant 241 : i32
    %108 = tpu.dynamic_rotate %87 by %c241_i32_33 dim 1 : vector<8x256xf32>, i32 -> vector<8x256xf32>
    %109 = vector.extract_strided_slice %0 {offsets = [6, 0], sizes = [1, 256], strides = [1, 1]} : vector<16x256xf32> to vector<1x256xf32>
    %110 = vector.broadcast %109 : vector<1x256xf32> to vector<8x256xf32>
    %111 = arith.mulf %108, %110 : vector<8x256xf32>
    %c240_i32_34 = arith.constant 240 : i32
    %112 = tpu.dynamic_rotate %87 by %c240_i32_34 dim 1 : vector<8x256xf32>, i32 -> vector<8x256xf32>
    %113 = vector.extract_strided_slice %0 {offsets = [7, 0], sizes = [1, 256], strides = [1, 1]} : vector<16x256xf32> to vector<1x256xf32>
    %114 = vector.broadcast %113 : vector<1x256xf32> to vector<8x256xf32>
    %115 = arith.mulf %112, %114 : vector<8x256xf32>
    %c239_i32_35 = arith.constant 239 : i32
    %116 = tpu.dynamic_rotate %87 by %c239_i32_35 dim 1 : vector<8x256xf32>, i32 -> vector<8x256xf32>
    %117 = vector.extract_strided_slice %0 {offsets = [8, 0], sizes = [1, 256], strides = [1, 1]} : vector<16x256xf32> to vector<1x256xf32>
    %118 = vector.broadcast %117 : vector<1x256xf32> to vector<8x256xf32>
    %119 = arith.mulf %116, %118 : vector<8x256xf32>
    %120 = tpu.concatenate %91, %95, %99, %103, %87, %107, %111, %115, %119 in 0 : vector<8x256xf32>, vector<8x256xf32>, vector<8x256xf32>, vector<8x256xf32>, vector<8x256xf32>, vector<8x256xf32>, vector<8x256xf32>, vector<8x256xf32>, vector<8x256xf32> -> vector<72x256xf32>
    %cst_36 = arith.constant dense<0.000000e+00> : vector<8x256xf32>
    %121 = tpu.matmul %1, %120, %cst_36 {dimension_numbers = #tpu.dot_dimension_numbers<[1], [0], [0], [1], [0, 0, 1, 1], [], []>} : vector<8x72xf32>, vector<72x256xf32>, vector<8x256xf32> -> vector<8x256xf32>
    %122 = vector.broadcast %3 : vector<8x1xf32> to vector<8x256xf32>
    %123 = arith.addf %121, %122 : vector<8x256xf32>
    %cst_37 = arith.constant 0.000000e+00 : f32
    %124 = vector.broadcast %cst_37 : f32 to vector<8x256xf32>
    %125 = arith.maximumf %123, %124 : vector<8x256xf32>
    %c17_i32_38 = arith.constant 17 : i32
    %126 = tpu.dynamic_rotate %125 by %c17_i32_38 dim 1 : vector<8x256xf32>, i32 -> vector<8x256xf32>
    %127 = vector.extract_strided_slice %0 {offsets = [0, 0], sizes = [1, 256], strides = [1, 1]} : vector<16x256xf32> to vector<1x256xf32>
    %128 = vector.broadcast %127 : vector<1x256xf32> to vector<8x256xf32>
    %129 = arith.mulf %126, %128 : vector<8x256xf32>
    %c16_i32_39 = arith.constant 16 : i32
    %130 = tpu.dynamic_rotate %125 by %c16_i32_39 dim 1 : vector<8x256xf32>, i32 -> vector<8x256xf32>
    %131 = vector.extract_strided_slice %0 {offsets = [1, 0], sizes = [1, 256], strides = [1, 1]} : vector<16x256xf32> to vector<1x256xf32>
    %132 = vector.broadcast %131 : vector<1x256xf32> to vector<8x256xf32>
    %133 = arith.mulf %130, %132 : vector<8x256xf32>
    %c15_i32_40 = arith.constant 15 : i32
    %134 = tpu.dynamic_rotate %125 by %c15_i32_40 dim 1 : vector<8x256xf32>, i32 -> vector<8x256xf32>
    %135 = vector.extract_strided_slice %0 {offsets = [2, 0], sizes = [1, 256], strides = [1, 1]} : vector<16x256xf32> to vector<1x256xf32>
    %136 = vector.broadcast %135 : vector<1x256xf32> to vector<8x256xf32>
    %137 = arith.mulf %134, %136 : vector<8x256xf32>
    %c1_i32_41 = arith.constant 1 : i32
    %138 = tpu.dynamic_rotate %125 by %c1_i32_41 dim 1 : vector<8x256xf32>, i32 -> vector<8x256xf32>
    %139 = vector.extract_strided_slice %0 {offsets = [3, 0], sizes = [1, 256], strides = [1, 1]} : vector<16x256xf32> to vector<1x256xf32>
    %140 = vector.broadcast %139 : vector<1x256xf32> to vector<8x256xf32>
    %141 = arith.mulf %138, %140 : vector<8x256xf32>
    %c255_i32_42 = arith.constant 255 : i32
    %142 = tpu.dynamic_rotate %125 by %c255_i32_42 dim 1 : vector<8x256xf32>, i32 -> vector<8x256xf32>
    %143 = vector.extract_strided_slice %0 {offsets = [5, 0], sizes = [1, 256], strides = [1, 1]} : vector<16x256xf32> to vector<1x256xf32>
    %144 = vector.broadcast %143 : vector<1x256xf32> to vector<8x256xf32>
    %145 = arith.mulf %142, %144 : vector<8x256xf32>
    %c241_i32_43 = arith.constant 241 : i32
    %146 = tpu.dynamic_rotate %125 by %c241_i32_43 dim 1 : vector<8x256xf32>, i32 -> vector<8x256xf32>
    %147 = vector.extract_strided_slice %0 {offsets = [6, 0], sizes = [1, 256], strides = [1, 1]} : vector<16x256xf32> to vector<1x256xf32>
    %148 = vector.broadcast %147 : vector<1x256xf32> to vector<8x256xf32>
    %149 = arith.mulf %146, %148 : vector<8x256xf32>
    %c240_i32_44 = arith.constant 240 : i32
    %150 = tpu.dynamic_rotate %125 by %c240_i32_44 dim 1 : vector<8x256xf32>, i32 -> vector<8x256xf32>
    %151 = vector.extract_strided_slice %0 {offsets = [7, 0], sizes = [1, 256], strides = [1, 1]} : vector<16x256xf32> to vector<1x256xf32>
    %152 = vector.broadcast %151 : vector<1x256xf32> to vector<8x256xf32>
    %153 = arith.mulf %150, %152 : vector<8x256xf32>
    %c239_i32_45 = arith.constant 239 : i32
    %154 = tpu.dynamic_rotate %125 by %c239_i32_45 dim 1 : vector<8x256xf32>, i32 -> vector<8x256xf32>
    %155 = vector.extract_strided_slice %0 {offsets = [8, 0], sizes = [1, 256], strides = [1, 1]} : vector<16x256xf32> to vector<1x256xf32>
    %156 = vector.broadcast %155 : vector<1x256xf32> to vector<8x256xf32>
    %157 = arith.mulf %154, %156 : vector<8x256xf32>
    %158 = tpu.concatenate %129, %133, %137, %141, %125, %145, %149, %153, %157 in 0 : vector<8x256xf32>, vector<8x256xf32>, vector<8x256xf32>, vector<8x256xf32>, vector<8x256xf32>, vector<8x256xf32>, vector<8x256xf32>, vector<8x256xf32>, vector<8x256xf32> -> vector<72x256xf32>
    %cst_46 = arith.constant dense<0.000000e+00> : vector<8x256xf32>
    %159 = tpu.matmul %2, %158, %cst_46 {dimension_numbers = #tpu.dot_dimension_numbers<[1], [0], [0], [1], [0, 0, 1, 1], [], []>} : vector<8x72xf32>, vector<72x256xf32>, vector<8x256xf32> -> vector<8x256xf32>
    %160 = vector.broadcast %4 : vector<8x1xf32> to vector<8x256xf32>
    %161 = arith.addf %159, %160 : vector<8x256xf32>
    %cst_47 = arith.constant 0.000000e+00 : f32
    %162 = vector.broadcast %cst_47 : f32 to vector<8x256xf32>
    %163 = arith.maximumf %161, %162 : vector<8x256xf32>
    %c1_48 = arith.constant 1 : index
    %c0_49 = arith.constant 0 : index
    %c0_50 = arith.constant 0 : index
    %164 = vector.load %arg7[%c1_48, %c0_49, %c0_50] : memref<2x8x256xf32, #tpu.memory_space<vmem>>, vector<1x8x256xf32>
    %165 = vector.shape_cast %164 : vector<1x8x256xf32> to vector<8x256xf32>
    %166 = vector.shape_cast %163 : vector<8x256xf32> to vector<1x8x256xf32>
    tpu.vector_store %arg7[%c1_48, %c0_49, %c0_50], %166 {strides = array<i32>} : memref<2x8x256xf32, #tpu.memory_space<vmem>>, vector<1x8x256xf32>,
    return
  }
  func.func @transform_0(%arg0: i32) -> (i32, i32, i32) {
    %c0_i32 = arith.constant 0 : i32
    %c0_i32_0 = arith.constant 0 : i32
    %c0_i32_1 = arith.constant 0 : i32
    return %arg0, %c0_i32, %c0_i32_0 : i32, i32, i32
  }
  func.func @transform_1(%arg0: i32) -> (i32, i32) {
    %c0_i32 = arith.constant 0 : i32
    %c0_i32_0 = arith.constant 0 : i32
    %c0_i32_1 = arith.constant 0 : i32
    return %c0_i32, %c0_i32_0 : i32, i32
  }
  func.func @transform_2(%arg0: i32) -> (i32, i32) {
    %c0_i32 = arith.constant 0 : i32
    %c0_i32_0 = arith.constant 0 : i32
    %c0_i32_1 = arith.constant 0 : i32
    return %c0_i32, %c0_i32_0 : i32, i32
  }
  func.func @transform_3(%arg0: i32) -> (i32, i32) {
    %c0_i32 = arith.constant 0 : i32
    %c0_i32_0 = arith.constant 0 : i32
    %c0_i32_1 = arith.constant 0 : i32
    return %c0_i32, %c0_i32_0 : i32, i32
  }
  func.func @transform_4(%arg0: i32) -> (i32, i32) {
    %c0_i32 = arith.constant 0 : i32
    %c0_i32_0 = arith.constant 0 : i32
    %c0_i32_1 = arith.constant 0 : i32
    return %c0_i32, %c0_i32_0 : i32, i32
  }
  func.func @transform_5(%arg0: i32) -> (i32, i32) {
    %c0_i32 = arith.constant 0 : i32
    %c0_i32_0 = arith.constant 0 : i32
    %c0_i32_1 = arith.constant 0 : i32
    return %c0_i32, %c0_i32_0 : i32, i32
  }
  func.func @transform_6(%arg0: i32) -> (i32, i32, i32) {
    %c0_i32 = arith.constant 0 : i32
    %c0_i32_0 = arith.constant 0 : i32
    %c0_i32_1 = arith.constant 0 : i32
    return %arg0, %c0_i32, %c0_i32_0 : i32, i32, i32
  }
}

</mosaic_0001>

<bundles_post_ra>
// kernel: double_conv_forward.1
= control target key start
LH: loop header
LB: loop body
LE: loop exit
PB: predicated region body
PF: predicated region fallthrough
CT: control target
= control target key end

     0   :  { %s767_s23 = smov 16   ;;  %s768_s24 = smov 17   ;;  %v773_v2 = vmov 0.0   ;;  %v776_v5 = vmov 0   ;;  %v37_v7 = vlaneseq  ;;  %vm176_vm8 = vcmask 588800   ;;  %s1295_s0 = inlined_call_operand.vmem [shape: f32[2,8,256], index: 0, kind: input, shape index: {}]   ;;  %s1296_s3 = inlined_call_operand.vmem [shape: f32[8,1], index: 3, kind: input, shape index: {}]   ;;  %s1297_s5 = inlined_call_operand.vmem [shape: f32[16,256], index: 5, kind: input, shape index: {}]   ;;  %s1298_s1 = inlined_call_operand.vmem [shape: f32[8,72], index: 1, kind: input, shape index: {}]   ;;  %s1299_s4 = inlined_call_operand.vmem [shape: f32[8,1], index: 4, kind: input, shape index: {}]   ;;  %s1300_s2 = inlined_call_operand.vmem [shape: f32[8,72], index: 2, kind: input, shape index: {}]   ;;  %s1301_s6 = inlined_call_operand.vmem [shape: f32[2,8,256], index: 6, kind: output, shape index: {}]  }
   0x1   :  { %v815_v0 = vld [vmem:[%s1295_s0] sm:$0xff]  ;;  %v824_v1 = vld [vmem:[%s1295_s0 + $0x8] sm:$0xff]  ;;  %s769_s27 = smov 15   ;;  %s770_s28 = smov 1   ;;  %244 = vmatprep.mubr.f32.mxu0 %v773_v2  ;;  %389 = vmatprep.mubr.f32.mxu1 %v773_v2  ;;  %v859_v3 = vld [vmem:[%s1295_s0 + $0x18] sm:$0xff] }
   0x2   :  { %52 = vrot.lane.b32.xlu1 %v815_v0, %s767_s23  ;;  %33 = vrot.lane.b32.xlu0 %v815_v0, %s768_s24  ;;  %s771_s29 = smov 127   ;;  %s772_s30 = smov 113   ;;  %v864_v4 = vld [vmem:[%s1295_s0 + $0x10] sm:$0xff]  ;;  %v29_v6 = vld [vmem:[%s1296_s3] sm:$0xff]  ;;  %v901_v8 = vshrl.u32 %v37_v7, 7  ;;  %v903_v9 = vand.u32 127, %v37_v7 }
   0x3   :  { %s774_s7 = smov 112   ;;  %s775_s8 = smov 111   ;;  %766 = vset.pattern.permute.xlu0 %v776_v5  ;;  %v912_v12 = vld [vmem:[%s1297_s5] sm:$0xff]  ;;  %v917_v13 = vld [vmem:[%s1297_s5 + $0x8] sm:$0xff] }
   0x4   :  { %v61_v10 = vsub.s32 1, %v901_v8  ;;  %v907_v11 = vsub.s32 0, %v901_v8  ;;  %vm56_vm0 = vcmp.lt.s32.totalorder %v903_v9, 16  ;;  %vm39_vm1 = vcmp.lt.s32.totalorder %v903_v9, 17 }
   0x5   :  { %v78_v22 = vsub.s32 2, %v901_v8  ;;  %v95_v23 = vsub.s32 3, %v901_v8  ;;  %vm73_vm2 = vcmp.lt.s32.totalorder %v903_v9, 15  ;;  %vm90_vm3 = vcmp.lt.s32.totalorder %v903_v9, 1 }
   0x6   :  { %54 = vrot.lane.b32.xlu1 %v824_v1, %s767_s23  ;;  %35 = vrot.lane.b32.xlu0 %v824_v1, %s768_s24  ;;  %v922_v16 = vrot.slane %v912_v12, %v61_v10  ;;  %v926_v17 = vrot.slane %v912_v12, %v907_v11  ;;  %v930_v18 = vrot.slane %v917_v13, %v907_v11  ;;  %v112_v36 = vsub.s32 5, %v901_v8 }
   0x7   :  { %v933_v19 = vrot.slane %v917_v13, %v61_v10  ;;  %v953_v37 = vrot.slane %v912_v12, %v78_v22  ;;  %v956_v38 = vrot.slane %v917_v13, %v78_v22  ;;  %v959_v39 = vrot.slane %v912_v12, %v95_v23 }
   0x8   :  { %v962_v40 = vrot.slane %v917_v13, %v95_v23  ;;  %vm107_vm4 = vcmp.lt.s32.totalorder %v903_v9, 127  ;;  %v974_v47 = vrot.slane %v912_v12, %v112_v36  ;;  %v977_v48 = vrot.slane %v917_v13, %v112_v36 }
   0x9   :  { %v129_v59 = vsub.s32 6, %v901_v8  ;;  %v146_v62 = vsub.s32 7, %v901_v8  ;;  %vm124_vm5 = vcmp.lt.s32.totalorder %v903_v9, 113  ;;  %vm141_vm6 = vcmp.lt.s32.totalorder %v903_v9, 112 }
   0xa   :  { %71 = vrot.lane.b32.xlu1 %v824_v1, %s769_s27  ;;  %69 = vrot.lane.b32.xlu0 %v815_v0, %s769_s27  ;;  %vm158_vm7 = vcmp.lt.s32.totalorder %v903_v9, 111 }
   0xb   :  { %v995_v10 = vrot.slane %v912_v12, %v129_v59  ;;  %v1002_v8 = vrot.slane %v912_v12, %v146_v62  ;;  %v25_v12 = vld [vmem:[%s1297_s5 + $0x10] sm:$0xff] }
   0xe   :  { %88 = vrot.lane.b32.xlu1 %v824_v1, %s770_s28  ;;  %86 = vrot.lane.b32.xlu0 %v815_v0, %s770_s28 }
  0x12   :  { %105 = vrot.lane.b32.xlu1 %v824_v1, %s771_s29  ;;  %103 = vrot.lane.b32.xlu0 %v815_v0, %s771_s29 }
  0x16   :  { %122 = vrot.lane.b32.xlu1 %v824_v1, %s772_s30  ;;  %120 = vrot.lane.b32.xlu0 %v815_v0, %s772_s30 }
  0x1a   :  { %139 = vrot.lane.b32.xlu1 %v824_v1, %s774_s7  ;;  %137 = vrot.lane.b32.xlu0 %v815_v0, %s774_s7 }
  0x1e   :  { %156 = vrot.lane.b32.xlu1 %v824_v1, %s775_s8  ;;  %154 = vrot.lane.b32.xlu0 %v815_v0, %s775_s8 }
  0x22   :  { %405 = vrot.lane.b32.xlu1 %v859_v3, %s768_s24  ;;  %403 = vrot.lane.b32.xlu0 %v864_v4, %s768_s24 }
  0x26   :  { %413 = vrot.lane.b32.xlu1 %v859_v3, %s767_s23  ;;  %411 = vrot.lane.b32.xlu0 %v864_v4, %s767_s23 }
  0x2a   :  { %421 = vrot.lane.b32.xlu1 %v859_v3, %s769_s27  ;;  %419 = vrot.lane.b32.xlu0 %v864_v4, %s769_s27 }
  0x2e   :  { %429 = vrot.lane.b32.xlu1 %v859_v3, %s770_s28  ;;  %427 = vrot.lane.b32.xlu0 %v864_v4, %s770_s28 }
  0x32   :  { %437 = vrot.lane.b32.xlu1 %v859_v3, %s771_s29  ;;  %435 = vrot.lane.b32.xlu0 %v864_v4, %s771_s29 }
  0x36   :  { %445 = vrot.lane.b32.xlu1 %v859_v3, %s772_s30  ;;  %443 = vrot.lane.b32.xlu0 %v864_v4, %s772_s30 }
  0x3a   :  { %453 = vrot.lane.b32.xlu1 %v859_v3, %s774_s7  ;;  %451 = vrot.lane.b32.xlu0 %v864_v4, %s774_s7 }
  0x3e   :  { %461 = vrot.lane.b32.xlu1 %v859_v3, %s775_s8  ;;  %459 = vrot.lane.b32.xlu0 %v864_v4, %s775_s8 }
  0x42   :  { %173 = vperm.xlu0 %766, %v29_v6  }
  0x74   :  { %v53_v14 = vpop.permute.xlu1 %52  ;;  %v34_v15 = vpop.permute.xlu0 %33 }
  0x78   :  { %v55_v20 = vpop.permute.xlu1 %54  ;;  %v36_v21 = vpop.permute.xlu0 %35 }
  0x79   :  { %v57_v24 = vsel %vm56_vm0, %v53_v14, %v55_v20  ;;  %v58_v25 = vsel %vm56_vm0, %v55_v20, %v53_v14  ;;  %v40_v26 = vsel %vm39_vm1, %v34_v15, %v36_v21  ;;  %v41_v27 = vsel %vm39_vm1, %v36_v21, %v34_v15 }
  0x7a   :  { %v67_v28 = vmul.f32 %v922_v16, %v58_v25  ;;  %v50_v29 = vmul.f32 %v926_v17, %v41_v27  ;;  %v51_v30 = vmul.f32 %v930_v18, %v40_v26  ;;  %v68_v31 = vmul.f32 %v933_v19, %v57_v24 }
  0x7b   :  { %v998_v14 = vrot.slane %v917_v13, %v129_v59  ;;  %v1005_v15 = vrot.slane %v917_v13, %v146_v62 }
  0x7c   :  { %v72_v32 = vpop.permute.xlu1 %71  ;;  %v70_v33 = vpop.permute.xlu0 %69  ;;  %v692_v34 = vpack.c.bf16 %v68_v31, %v51_v30  ;;  %v694_v35 = vpack.c.bf16 %v67_v28, %v50_v29  ;;  %v1030_v29 = vrot.slane %v25_v12, %v907_v11 }
  0x7d   :  { %v74_v41 = vsel %vm73_vm2, %v70_v33, %v72_v32  ;;  %v75_v42 = vsel %vm73_vm2, %v72_v32, %v70_v33 }
  0x7e   :  { %693 = vmatprep.subr.bf16.mxu0 %v692_v34  ;;  %v84_v49 = vmul.f32 %v953_v37, %v75_v42  ;;  %v85_v50 = vmul.f32 %v956_v38, %v74_v41 }
  0x7f   :  { %695 = vmatpush1.bf16.msra.mxu0 %v694_v35 }
  0x80   :  { %v89_v43 = vpop.permute.xlu1 %88  ;;  %v87_v44 = vpop.permute.xlu0 %86 }
  0x81   :  { %v91_v45 = vsel %vm90_vm3, %v87_v44, %v89_v43  ;;  %v92_v46 = vsel %vm90_vm3, %v89_v43, %v87_v44 }
  0x82   :  { %v101_v51 = vmul.f32 %v959_v39, %v92_v46  ;;  %v102_v52 = vmul.f32 %v962_v40, %v91_v45  ;;  %v1045_v45 = vld [vmem:[%s1298_s1] sm:$0xff] }
  0x84   :  { %v106_v53 = vpop.permute.xlu1 %105  ;;  %v104_v54 = vpop.permute.xlu0 %103  ;;  %v696_v55 = vpack.c.bf16 %v102_v52, %v85_v50  ;;  %v698_v56 = vpack.c.bf16 %v101_v51, %v84_v49 }
  0x85   :  { %v108_v57 = vsel %vm107_vm4, %v104_v54, %v106_v53  ;;  %v109_v58 = vsel %vm107_vm4, %v106_v53, %v104_v54 }
  0x86   :  { %v118_v60 = vmul.f32 %v974_v47, %v108_v57  ;;  %v119_v61 = vmul.f32 %v977_v48, %v109_v58  ;;  %697 = vmatprep.subr.bf16.mxu0 %v696_v55 }
  0x87   :  { %699 = vmatpush1.bf16.msra.mxu0 %v698_v56 }
  0x88   :  { %v123_v63 = vpop.permute.xlu1 %122  ;;  %v121_v5 = vpop.permute.xlu0 %120  ;;  %v700_v6 = vpack.c.bf16 %v119_v61, %v824_v1  ;;  %v702_v7 = vpack.c.bf16 %v118_v60, %v815_v0  ;;  %v26_v1 = vld [vmem:[%s1297_s5 + $0x18] sm:$0xff] }
  0x89   :  { %v125_v0 = vsel %vm124_vm5, %v121_v5, %v123_v63  ;;  %v126_v20 = vsel %vm124_vm5, %v123_v63, %v121_v5  ;;  %v1023_v24 = vrot.slane %v26_v1, %v907_v11 }
  0x8a   :  { %701 = vmatprep.subr.bf16.mxu0 %v700_v6  ;;  %v135_v25 = vmul.f32 %v995_v10, %v125_v0  ;;  %v136_v26 = vmul.f32 %v998_v14, %v126_v20 }
  0x8b   :  { %703 = vmatpush1.bf16.msra.mxu0 %v702_v7 }
  0x8c   :  { %v140_v21 = vpop.permute.xlu1 %139  ;;  %v138_v22 = vpop.permute.xlu0 %137 }
  0x8d   :  { %v142_v13 = vsel %vm141_vm6, %v138_v22, %v140_v21  ;;  %v143_v23 = vsel %vm141_vm6, %v140_v21, %v138_v22 }
  0x8e   :  { %v152_v27 = vmul.f32 %v1002_v8, %v142_v13  ;;  %v153_v28 = vmul.f32 %v1005_v15, %v143_v23 }
  0x90   :  { %v157_v30 = vpop.permute.xlu1 %156  ;;  %v155_v31 = vpop.permute.xlu0 %154  ;;  %v704_v32 = vpack.c.bf16 %v153_v28, %v136_v26  ;;  %v706_v33 = vpack.c.bf16 %v152_v27, %v135_v25 }
  0x91   :  { %v159_v34 = vsel %vm158_vm7, %v155_v31, %v157_v30  ;;  %v160_v35 = vsel %vm158_vm7, %v157_v30, %v155_v31 }
  0x92   :  { %v170_v36 = vmul.f32 %v1023_v24, %v160_v35  ;;  %705 = vmatprep.subr.bf16.mxu0 %v704_v32  ;;  %v169_v41 = vmul.f32 %v1030_v29, %v159_v34 }
  0x93   :  { %707 = vmatpush1.bf16.msra.mxu0 %v706_v33 }
  0x94   :  { %v406_v42 = vpop.permute.xlu1 %405  ;;  %v404_v43 = vpop.permute.xlu0 %403  ;;  %196 = vmatprep.subr.mxu0 %v170_v36 }
  0x95   :  { %v407_v11 = vsel %vm39_vm1, %v404_v43, %v406_v42  ;;  %v408_v44 = vsel %vm39_vm1, %v406_v42, %v404_v43 }
  0x96   :  { %v409_v46 = vmul.f32 %v408_v44, %v926_v17  ;;  %v410_v49 = vmul.f32 %v407_v11, %v930_v18 }
  0x97   :  { %197 = vmatpush1.msra.mxu0 %v169_v41 }
  0x98   :  { %v414_v50 = vpop.permute.xlu1 %413  ;;  %684 = vmatmul.mubr.msk.f32.vlgmr.msra.gmra.mrb[0].mxu0 %vm176_vm8, %v1045_v45  ;;  %v412_v51 = vpop.permute.xlu0 %411 }
  0x99   :  { %v415_v52 = vsel %vm56_vm0, %v412_v51, %v414_v50  ;;  %v416_v53 = vsel %vm56_vm0, %v414_v50, %v412_v51  ;;  %531 = vmatprep.mubr.f32.mxu0 %v773_v2 }
  0x9a   :  { %v417_v54 = vmul.f32 %v416_v53, %v922_v16  ;;  %v418_v55 = vmul.f32 %v415_v52, %v933_v19 }
  0x9c   :  { %v726_v56 = vpack.c.bf16 %v417_v54, %v409_v46  ;;  %v422_v57 = vpop.permute.xlu1 %421  ;;  %v420_v58 = vpop.permute.xlu0 %419  ;;  %v724_v59 = vpack.c.bf16 %v418_v55, %v410_v49 }
  0x9d   :  { %v423_v60 = vsel %vm73_vm2, %v420_v58, %v422_v57  ;;  %v424_v61 = vsel %vm73_vm2, %v422_v57, %v420_v58 }
  0x9e   :  { %725 = vmatprep.subr.bf16.mxu0 %v724_v59  ;;  %v425_v62 = vmul.f32 %v424_v61, %v953_v37  ;;  %v426_v63 = vmul.f32 %v423_v60, %v956_v38 }
  0x9f   :  { %727 = vmatpush1.bf16.msra.mxu0 %v726_v56 }
  0xa0   :  { %v430_v5 = vpop.permute.xlu1 %429  ;;  %v428_v6 = vpop.permute.xlu0 %427 }
  0xa1   :  { %v431_v7 = vsel %vm90_vm3, %v428_v6, %v430_v5  ;;  %v432_v1 = vsel %vm90_vm3, %v430_v5, %v428_v6 }
  0xa2   :  { %v433_v0 = vmul.f32 %v432_v1, %v959_v39  ;;  %v434_v20 = vmul.f32 %v431_v7, %v962_v40  ;;  %v30_v1 = vld [vmem:[%s1299_s4] sm:$0xff] }
  0xa4   :  { %v730_v21 = vpack.c.bf16 %v433_v0, %v425_v62  ;;  %v438_v22 = vpop.permute.xlu1 %437  ;;  %v436_v12 = vpop.permute.xlu0 %435  ;;  %v728_v13 = vpack.c.bf16 %v434_v20, %v426_v63 }
  0xa5   :  { %v439_v23 = vsel %vm107_vm4, %v436_v12, %v438_v22  ;;  %v440_v25 = vsel %vm107_vm4, %v438_v22, %v436_v12 }
  0xa6   :  { %v441_v26 = vmul.f32 %v439_v23, %v974_v47  ;;  %v442_v27 = vmul.f32 %v440_v25, %v977_v48  ;;  %729 = vmatprep.subr.bf16.mxu0 %v728_v13 }
  0xa7   :  { %731 = vmatpush1.bf16.msra.mxu0 %v730_v21 }
  0xa8   :  { %v734_v28 = vpack.c.bf16 %v441_v26, %v864_v4  ;;  %v446_v30 = vpop.permute.xlu1 %445  ;;  %v444_v31 = vpop.permute.xlu0 %443  ;;  %v732_v32 = vpack.c.bf16 %v442_v27, %v859_v3 }
  0xa9   :  { %v447_v33 = vsel %vm124_vm5, %v444_v31, %v446_v30  ;;  %v448_v34 = vsel %vm124_vm5, %v446_v30, %v444_v31 }
  0xaa   :  { %733 = vmatprep.subr.bf16.mxu0 %v732_v32  ;;  %v449_v35 = vmul.f32 %v447_v33, %v995_v10  ;;  %v450_v36 = vmul.f32 %v448_v34, %v998_v14 }
  0xab   :  { %735 = vmatpush1.bf16.msra.mxu0 %v734_v28 }
  0xac   :  { %v454_v41 = vpop.permute.xlu1 %453  ;;  %v452_v42 = vpop.permute.xlu0 %451 }
  0xad   :  { %v455_v4 = vsel %vm141_vm6, %v452_v42, %v454_v41  ;;  %v456_v3 = vsel %vm141_vm6, %v454_v41, %v452_v42 }
  0xae   :  { %v457_v43 = vmul.f32 %v455_v4, %v1002_v8  ;;  %v458_v11 = vmul.f32 %v456_v3, %v1005_v15 }
  0xb0   :  { %v738_v44 = vpack.c.bf16 %v457_v43, %v449_v35  ;;  %v462_v46 = vpop.permute.xlu1 %461  ;;  %v736_v49 = vpack.c.bf16 %v458_v11, %v450_v36  ;;  %v460_v50 = vpop.permute.xlu0 %459 }
  0xb1   :  { %v463_v51 = vsel %vm158_vm7, %v460_v50, %v462_v46  ;;  %v464_v52 = vsel %vm158_vm7, %v462_v46, %v460_v50 }
  0xb2   :  { %737 = vmatprep.subr.bf16.mxu0 %v736_v49  ;;  %v466_v53 = vmul.f32 %v464_v52, %v1023_v24  ;;  %v465_v54 = vmul.f32 %v463_v51, %v1030_v29 }
  0xb3   :  { %739 = vmatpush1.bf16.msra.mxu0 %v738_v44 }
  0xb4   :  { %483 = vmatprep.subr.mxu0 %v466_v53 }
  0xb7   :  { %484 = vmatpush1.msra.mxu0 %v465_v54 }
  0xb8   :  { %688 = vmatmul.mubr.msk.f32.vlgmr.msra.gmra.mrb[2].mxu0 %vm176_vm8, %v1045_v45 }
  0xc1   :  { %v174_v55 = vpop.permute.xlu0 %173 }
 0x16b   :  { %v246_v56 = vpop.f32.mrb[0].mxu0 }
 0x16c   :  { %v247_v57 = vadd.f32 %v246_v56, %v174_v55  ;;  %v248_v58 = vpop.f32.mrb[1].mxu0 }
 0x16d   :  { %v249_v60 = vadd.f32 %v248_v58, %v174_v55 }
 0x16e   :  { %v1098_v59 = vmax.f32 %v247_v57, 0.0 }
 0x16f   :  { %v1104_v61 = vmax.f32 %v249_v60, 0.0 }
 0x170   :  { %261 = vrot.lane.b32.xlu0 %v1098_v59, %s767_s23  ;;  %253 = vrot.lane.b32.xlu1 %v1098_v59, %s768_s24 }
 0x174   :  { %269 = vrot.lane.b32.xlu0 %v1098_v59, %s769_s27  ;;  %255 = vrot.lane.b32.xlu1 %v1104_v61, %s768_s24 }
 0x178   :  { %277 = vrot.lane.b32.xlu0 %v1098_v59, %s770_s28  ;;  %263 = vrot.lane.b32.xlu1 %v1104_v61, %s767_s23 }
 0x17c   :  { %285 = vrot.lane.b32.xlu0 %v1098_v59, %s771_s29  ;;  %271 = vrot.lane.b32.xlu1 %v1104_v61, %s769_s27 }
 0x180   :  { %293 = vrot.lane.b32.xlu0 %v1098_v59, %s772_s30  ;;  %279 = vrot.lane.b32.xlu1 %v1104_v61, %s770_s28 }
 0x184   :  { %301 = vrot.lane.b32.xlu0 %v1098_v59, %s774_s7  ;;  %287 = vrot.lane.b32.xlu1 %v1104_v61, %s771_s29 }
 0x188   :  { %309 = vrot.lane.b32.xlu0 %v1098_v59, %s775_s8  ;;  %295 = vrot.lane.b32.xlu1 %v1104_v61, %s772_s30 }
 0x18b   :  { %v533_v45 = vpop.f32.mrb[2].mxu0 }
 0x18c   :  { %v534_v62 = vadd.f32 %v533_v45, %v174_v55  ;;  %v535_v63 = vpop.f32.mrb[3].mxu0  ;;  %303 = vrot.lane.b32.xlu1 %v1104_v61, %s774_s7 }
 0x18d   :  { %v536_v6 = vadd.f32 %v535_v63, %v174_v55 }
 0x18e   :  { %v1132_v5 = vmax.f32 %v534_v62, 0.0 }
 0x18f   :  { %v1138_v7 = vmax.f32 %v536_v6, 0.0 }
 0x190   :  { %540 = vrot.lane.b32.xlu0 %v1132_v5, %s768_s24  ;;  %311 = vrot.lane.b32.xlu1 %v1104_v61, %s775_s8 }
 0x194   :  { %548 = vrot.lane.b32.xlu0 %v1132_v5, %s767_s23  ;;  %542 = vrot.lane.b32.xlu1 %v1138_v7, %s768_s24 }
 0x198   :  { %556 = vrot.lane.b32.xlu0 %v1132_v5, %s769_s27  ;;  %550 = vrot.lane.b32.xlu1 %v1138_v7, %s767_s23 }
 0x19c   :  { %564 = vrot.lane.b32.xlu0 %v1132_v5, %s770_s28  ;;  %558 = vrot.lane.b32.xlu1 %v1138_v7, %s769_s27 }
 0x1a0   :  { %572 = vrot.lane.b32.xlu0 %v1132_v5, %s771_s29  ;;  %566 = vrot.lane.b32.xlu1 %v1138_v7, %s770_s28 }
 0x1a4   :  { %580 = vrot.lane.b32.xlu0 %v1132_v5, %s772_s30  ;;  %574 = vrot.lane.b32.xlu1 %v1138_v7, %s771_s29 }
 0x1a8   :  { %588 = vrot.lane.b32.xlu0 %v1132_v5, %s774_s7  ;;  %582 = vrot.lane.b32.xlu1 %v1138_v7, %s772_s30 }
 0x1ac   :  { %596 = vrot.lane.b32.xlu0 %v1132_v5, %s775_s8  ;;  %590 = vrot.lane.b32.xlu1 %v1138_v7, %s774_s7 }
 0x1b0   :  { %319 = vperm.xlu0 %766, %v30_v1   ;;  %598 = vrot.lane.b32.xlu1 %v1138_v7, %s775_s8 }
 0x1e2   :  { %v262_v0 = vpop.permute.xlu0 %261  ;;  %v254_v20 = vpop.permute.xlu1 %253 }
 0x1e6   :  { %v270_v21 = vpop.permute.xlu0 %269  ;;  %v256_v22 = vpop.permute.xlu1 %255 }
 0x1e7   :  { %v257_v12 = vsel %vm39_vm1, %v254_v20, %v256_v22  ;;  %v258_v13 = vsel %vm39_vm1, %v256_v22, %v254_v20 }
 0x1e8   :  { %v259_v28 = vmul.f32 %v258_v13, %v926_v17  ;;  %v260_v31 = vmul.f32 %v257_v12, %v930_v18 }
 0x1ea   :  { %v278_v23 = vpop.permute.xlu0 %277  ;;  %v264_v25 = vpop.permute.xlu1 %263 }
 0x1eb   :  { %v265_v26 = vsel %vm56_vm0, %v262_v0, %v264_v25  ;;  %v266_v27 = vsel %vm56_vm0, %v264_v25, %v262_v0 }
 0x1ec   :  { %v267_v30 = vmul.f32 %v266_v27, %v922_v16  ;;  %v268_v32 = vmul.f32 %v265_v26, %v933_v19 }
 0x1ee   :  { %v286_v33 = vpop.permute.xlu0 %285  ;;  %v272_v34 = vpop.permute.xlu1 %271  ;;  %v708_v35 = vpack.c.bf16 %v268_v32, %v260_v31  ;;  %v710_v36 = vpack.c.bf16 %v267_v30, %v259_v28 }
 0x1ef   :  { %v273_v41 = vsel %vm73_vm2, %v270_v21, %v272_v34  ;;  %v274_v42 = vsel %vm73_vm2, %v272_v34, %v270_v21  ;;  %v1226_v34 = vld [vmem:[%s1300_s2] sm:$0xff] }
 0x1f0   :  { %709 = vmatprep.subr.bf16.mxu1 %v708_v35  ;;  %v275_v44 = vmul.f32 %v274_v42, %v953_v37  ;;  %v276_v46 = vmul.f32 %v273_v41, %v956_v38 }
 0x1f1   :  { %711 = vmatpush1.bf16.msra.mxu1 %v710_v36 }
 0x1f2   :  { %v294_v4 = vpop.permute.xlu0 %293  ;;  %v280_v3 = vpop.permute.xlu1 %279 }
 0x1f3   :  { %v281_v43 = vsel %vm90_vm3, %v278_v23, %v280_v3  ;;  %v282_v11 = vsel %vm90_vm3, %v280_v3, %v278_v23 }
 0x1f4   :  { %v283_v49 = vmul.f32 %v282_v11, %v959_v39  ;;  %v284_v50 = vmul.f32 %v281_v43, %v962_v40 }
 0x1f6   :  { %v288_v51 = vpop.permute.xlu1 %287  ;;  %v712_v52 = vpack.c.bf16 %v284_v50, %v276_v46  ;;  %v714_v53 = vpack.c.bf16 %v283_v49, %v275_v44  ;;  %v302_v56 = vpop.permute.xlu0 %301 }
 0x1f7   :  { %v289_v54 = vsel %vm107_vm4, %v286_v33, %v288_v51  ;;  %v290_v55 = vsel %vm107_vm4, %v288_v51, %v286_v33 }
 0x1f8   :  { %v291_v57 = vmul.f32 %v289_v54, %v974_v47  ;;  %v292_v58 = vmul.f32 %v290_v55, %v977_v48  ;;  %713 = vmatprep.subr.bf16.mxu1 %v712_v52 }
 0x1f9   :  { %715 = vmatpush1.bf16.msra.mxu1 %v714_v53 }
 0x1fa   :  { %v296_v60 = vpop.permute.xlu1 %295  ;;  %v716_v45 = vpack.c.bf16 %v292_v58, %v1104_v61  ;;  %v718_v62 = vpack.c.bf16 %v291_v57, %v1098_v59  ;;  %v310_v1 = vpop.permute.xlu0 %309 }
 0x1fb   :  { %v297_v63 = vsel %vm124_vm5, %v294_v4, %v296_v60  ;;  %v298_v6 = vsel %vm124_vm5, %v296_v60, %v294_v4 }
 0x1fc   :  { %717 = vmatprep.subr.bf16.mxu1 %v716_v45  ;;  %v299_v61 = vmul.f32 %v297_v63, %v995_v10  ;;  %v300_v59 = vmul.f32 %v298_v6, %v998_v14 }
 0x1fd   :  { %719 = vmatpush1.bf16.msra.mxu1 %v718_v62 }
 0x1fe   :  { %v304_v0 = vpop.permute.xlu1 %303 }
 0x1ff   :  { %v305_v20 = vsel %vm141_vm6, %v302_v56, %v304_v0  ;;  %v306_v21 = vsel %vm141_vm6, %v304_v0, %v302_v56 }
 0x200   :  { %v307_v22 = vmul.f32 %v305_v20, %v1002_v8  ;;  %v308_v12 = vmul.f32 %v306_v21, %v1005_v15 }
 0x202   :  { %v541_v13 = vpop.permute.xlu0 %540  ;;  %v312_v23 = vpop.permute.xlu1 %311  ;;  %v720_v25 = vpack.c.bf16 %v308_v12, %v300_v59  ;;  %v722_v26 = vpack.c.bf16 %v307_v22, %v299_v61 }
 0x203   :  { %v314_v27 = vsel %vm158_vm7, %v312_v23, %v310_v1  ;;  %v313_v28 = vsel %vm158_vm7, %v310_v1, %v312_v23 }
 0x204   :  { %v316_v30 = vmul.f32 %v314_v27, %v1023_v24  ;;  %721 = vmatprep.subr.bf16.mxu1 %v720_v25  ;;  %v315_v33 = vmul.f32 %v313_v28, %v1030_v29 }
 0x205   :  { %723 = vmatpush1.bf16.msra.mxu1 %v722_v26 }
 0x206   :  { %v549_v31 = vpop.permute.xlu0 %548  ;;  %341 = vmatprep.subr.mxu1 %v316_v30  ;;  %v543_v32 = vpop.permute.xlu1 %542 }
 0x207   :  { %v544_v35 = vsel %vm39_vm1, %v541_v13, %v543_v32  ;;  %v545_v36 = vsel %vm39_vm1, %v543_v32, %v541_v13 }
 0x208   :  { %v546_v43 = vmul.f32 %v545_v36, %v926_v17  ;;  %v547_v11 = vmul.f32 %v544_v35, %v930_v18 }
 0x209   :  { %342 = vmatpush1.msra.mxu1 %v315_v33 }
 0x20a   :  { %v557_v41 = vpop.permute.xlu0 %556  ;;  %685 = vmatmul.mubr.msk.f32.vlgmr.msra.gmra.mrb[0].mxu1 %vm176_vm8, %v1226_v34  ;;  %v551_v42 = vpop.permute.xlu1 %550 }
 0x20b   :  { %v552_v4 = vsel %vm56_vm0, %v549_v31, %v551_v42  ;;  %v553_v3 = vsel %vm56_vm0, %v551_v42, %v549_v31  ;;  %668 = vmatprep.mubr.f32.mxu1 %v773_v2 }
 0x20c   :  { %v554_v44 = vmul.f32 %v553_v3, %v922_v16  ;;  %v555_v46 = vmul.f32 %v552_v4, %v933_v19 }
 0x20e   :  { %v742_v49 = vpack.c.bf16 %v554_v44, %v546_v43  ;;  %v565_v50 = vpop.permute.xlu0 %564  ;;  %v559_v51 = vpop.permute.xlu1 %558  ;;  %v740_v52 = vpack.c.bf16 %v555_v46, %v547_v11 }
 0x20f   :  { %v560_v53 = vsel %vm73_vm2, %v557_v41, %v559_v51  ;;  %v561_v54 = vsel %vm73_vm2, %v559_v51, %v557_v41 }
 0x210   :  { %741 = vmatprep.subr.bf16.mxu1 %v740_v52  ;;  %v562_v19 = vmul.f32 %v561_v54, %v953_v37  ;;  %v563_v55 = vmul.f32 %v560_v53, %v956_v38 }
 0x211   :  { %743 = vmatpush1.bf16.msra.mxu1 %v742_v49 }
 0x212   :  { %v573_v2 = vpop.permute.xlu0 %572  ;;  %v567_v17 = vpop.permute.xlu1 %566 }
 0x213   :  { %v568_v18 = vsel %vm90_vm3, %v565_v50, %v567_v17  ;;  %v569_v16 = vsel %vm90_vm3, %v567_v17, %v565_v50 }
 0x214   :  { %v570_v56 = vmul.f32 %v569_v16, %v959_v39  ;;  %v571_v57 = vmul.f32 %v568_v18, %v962_v40 }
 0x216   :  { %v746_v58 = vpack.c.bf16 %v570_v56, %v562_v19  ;;  %v581_v60 = vpop.permute.xlu0 %580  ;;  %v575_v45 = vpop.permute.xlu1 %574  ;;  %v744_v62 = vpack.c.bf16 %v571_v57, %v563_v55 }
 0x217   :  { %v576_v63 = vsel %vm107_vm4, %v573_v2, %v575_v45  ;;  %v577_v6 = vsel %vm107_vm4, %v575_v45, %v573_v2 }
 0x218   :  { %v578_v1 = vmul.f32 %v576_v63, %v974_v47  ;;  %v579_v37 = vmul.f32 %v577_v6, %v977_v48  ;;  %745 = vmatprep.subr.bf16.mxu1 %v744_v62 }
 0x219   :  { %747 = vmatpush1.bf16.msra.mxu1 %v746_v58 }
 0x21a   :  { %v750_v38 = vpack.c.bf16 %v578_v1, %v1132_v5  ;;  %v583_v39 = vpop.permute.xlu1 %582  ;;  %v748_v40 = vpack.c.bf16 %v579_v37, %v1138_v7  ;;  %v589_v0 = vpop.permute.xlu0 %588 }
 0x21b   :  { %v584_v20 = vsel %vm124_vm5, %v581_v60, %v583_v39  ;;  %v585_v21 = vsel %vm124_vm5, %v583_v39, %v581_v60 }
 0x21c   :  { %749 = vmatprep.subr.bf16.mxu1 %v748_v40  ;;  %v586_v5 = vmul.f32 %v584_v20, %v995_v10  ;;  %v587_v7 = vmul.f32 %v585_v21, %v998_v14 }
 0x21d   :  { %751 = vmatpush1.bf16.msra.mxu1 %v750_v38 }
 0x21e   :  { %v591_v61 = vpop.permute.xlu1 %590  ;;  %v597_v12 = vpop.permute.xlu0 %596 }
 0x21f   :  { %v592_v47 = vsel %vm141_vm6, %v589_v0, %v591_v61  ;;  %v593_v48 = vsel %vm141_vm6, %v591_v61, %v589_v0 }
 0x220   :  { %v594_v59 = vmul.f32 %v592_v47, %v1002_v8  ;;  %v595_v22 = vmul.f32 %v593_v48, %v1005_v15 }
 0x222   :  { %v754_v13 = vpack.c.bf16 %v594_v59, %v586_v5  ;;  %v599_v23 = vpop.permute.xlu1 %598  ;;  %v752_v25 = vpack.c.bf16 %v595_v22, %v587_v7 }
 0x223   :  { %v601_v26 = vsel %vm158_vm7, %v599_v23, %v597_v12  ;;  %v600_v27 = vsel %vm158_vm7, %v597_v12, %v599_v23 }
 0x224   :  { %v603_v28 = vmul.f32 %v601_v26, %v1023_v24  ;;  %753 = vmatprep.subr.bf16.mxu1 %v752_v25  ;;  %v602_v10 = vmul.f32 %v600_v27, %v1030_v29 }
 0x225   :  { %755 = vmatpush1.bf16.msra.mxu1 %v754_v13 }
 0x226   :  { %620 = vmatprep.subr.mxu1 %v603_v28 }
 0x229   :  { %621 = vmatpush1.msra.mxu1 %v602_v10 }
 0x22a   :  { %689 = vmatmul.mubr.msk.f32.vlgmr.msra.gmra.mrb[2].mxu1 %vm176_vm8, %v1226_v34 }
 0x22f   :  { %v320_v14 = vpop.permute.xlu0 %319 }
 0x2dd   :  { %v391_v8 = vpop.f32.mrb[0].mxu1 }
 0x2de   :  { %v392_v15 = vadd.f32 %v391_v8, %v320_v14  ;;  %v393_v30 = vpop.f32.mrb[1].mxu1 }
 0x2df   :  { %v394_v31 = vadd.f32 %v393_v30, %v320_v14 }
 0x2e0   :  { %v396_v32 = vmax.f32 %v392_v15, 0.0 }
 0x2e1   :  { %v397_v33 = vmax.f32 %v394_v31, 0.0 }
 0x2e2   :  { %398 = vst [vmem:[%s1301_s6] sm:$0xff] %v396_v32 }
 0x2e3   :  { %399 = vst [vmem:[%s1301_s6 + $0x8] sm:$0xff] %v397_v33 }
 0x2fd   :  { %v670_v9 = vpop.f32.mrb[2].mxu1 }
 0x2fe   :  { %v671_v24 = vadd.f32 %v670_v9, %v320_v14  ;;  %v672_v29 = vpop.f32.mrb[3].mxu1 }
 0x2ff   :  { %v673_v35 = vadd.f32 %v672_v29, %v320_v14 }
 0x300   :  { %v675_v34 = vmax.f32 %v671_v24, 0.0 }
 0x301   :  { %v676_v36 = vmax.f32 %v673_v35, 0.0 }
 0x302   :  { %690 = vst [vmem:[%s1301_s6 + $0x10] sm:$0xff] %v675_v34 }
 0x303   :  { %691 = vst [vmem:[%s1301_s6 + $0x18] sm:$0xff] %v676_v36 }

</bundles_post_ra>
